<compile_context>
chip_gen: v7x
topology: tpu7x:2x2x1
jax: 0.10.0
libtpu: 0.0.40
codegen_flags: <defaults>
</compile_context>

<pallas_src>
import math

import jax
import jax.numpy as jnp
from jax.experimental import pallas as pl
from jax.experimental.pallas import tpu as pltpu


def _ffn_kernel(x_ref, w1_ref, w2_ref, w3_ref, o_ref, acc_ref):
    """One (row-tile, hidden-tile) step of the fused SwiGLU MLP."""
    h_idx = pl.program_id(1)

    @pl.when(h_idx == 0)
    def _():
        acc_ref[...] = jnp.zeros_like(acc_ref)

    x = x_ref[...]                                               # (tm, D)
    # fc1 / fc2 for this hidden tile (MXU, f32 accumulation).
    h1 = jnp.dot(x, w1_ref[...], preferred_element_type=jnp.float32)   # (tm, th)
    h2 = jnp.dot(x, w2_ref[...], preferred_element_type=jnp.float32)   # (tm, th)
    # SiLU(h1) * h2  -- sigmoid written via exp so it lowers to the EUP.
    sig = 1.0 / (1.0 + jnp.exp(-h1))
    h = (h1 * sig) * h2                                          # (tm, th) f32
    # Partial fc3 contribution of this hidden tile, accumulated in f32.
    acc_ref[...] += jnp.dot(h.astype(w3_ref.dtype), w3_ref[...],
                            preferred_element_type=jnp.float32)  # (tm, D)

    @pl.when(h_idx == pl.num_programs(1) - 1)
    def _():
        o_ref[...] = acc_ref[...].astype(o_ref.dtype)


def _pick_tiles(rows, emb_dim, hidden_dim, dtype_bytes):
    """Generation-aware (row tile, hidden tile, vmem_limit_bytes)."""
    try:
        info = pltpu.get_tpu_info()
        vmem_cap = int(getattr(info, "vmem_capacity_bytes", 64 * 1024 * 1024))
    except Exception:
        vmem_cap = 64 * 1024 * 1024  # conservative: v7x has 64 MiB per TC
    budget = min(int(vmem_cap * 0.7), 96 * 1024 * 1024)

    # Hidden tile: largest divisor of hidden_dim that is a multiple of 128
    # (lane-dense matmul operands), capped at 512; tiny-H fallback = full dim.
    th_cands = [d for d in range(128, min(hidden_dim, 512) + 1, 128)
                if hidden_dim % d == 0]
    th = max(th_cands) if th_cands else hidden_dim

    def vmem_est(tm, th_):
        weights = 2 * 3 * emb_dim * th_ * dtype_bytes      # w1t/w2t/w3t, double-buffered
        io = 2 * 2 * tm * emb_dim * dtype_bytes            # x + out tiles, double-buffered
        acc = tm * emb_dim * 4                             # f32 accumulator scratch
        inter = 3 * tm * th_ * 4                           # h1/h2/h f32 intermediates
        return weights + io + acc + inter

    # Row tile: multiple of 8, at most 512, and (when rows allow) small enough
    # that the "parallel" axis keeps >= 2 blocks for v7x's two TensorCores.
    if rows >= 16:
        tm_cap = min(512, max(8, 8 * (rows // 2 // 8)))
    else:
        tm_cap = 8
    tm = 8
    for cand in range(tm_cap, 7, -8):
        if vmem_est(cand, th) <= budget:
            tm = cand
            break

    vmem_limit = min(vmem_cap, max(vmem_est(tm, th) + (16 << 20), 32 << 20))
    return tm, th, vmem_limit


def feed_forward(x, w1, w2, w3):
    """SwiGLU FeedForward.

    x:  [..., emb_dim]
    w1: [hidden_dim, emb_dim]   (PyTorch nn.Linear weight layout, fc1)
    w2: [hidden_dim, emb_dim]   (fc2)
    w3: [emb_dim, hidden_dim]   (fc3)
    """
    orig_shape = x.shape
    emb_dim = orig_shape[-1]
    hidden_dim = w1.shape[0]
    rows = math.prod(orig_shape[:-1])
    x2d = x.reshape(rows, emb_dim)

    # Transpose weights once so the kernel does plain row-major matmuls.
    w1t = w1.T            # (emb_dim, hidden_dim)
    w2t = w2.T            # (emb_dim, hidden_dim)
    w3t = w3.T            # (hidden_dim, emb_dim)

    dtype_bytes = jnp.dtype(x.dtype).itemsize
    tm, th, vmem_limit = _pick_tiles(rows, emb_dim, hidden_dim, dtype_bytes)

    # Pad rows up to a multiple of the row tile (padded rows compute zeros and
    # are sliced off afterwards) -- avoids the "one giant block" fallback.
    padded_rows = ((rows + tm - 1) // tm) * tm
    if padded_rows != rows:
        x2d = jnp.pad(x2d, ((0, padded_rows - rows), (0, 0)))

    grid = (padded_rows // tm, hidden_dim // th)

    # NOTE: for production shapes emb_dim should be a multiple of 128 so the
    # output tile is lane-dense (unmasked vst); the tiny demo D=32 is exempt
    # because the block spans the full last dim.
    cost = pl.CostEstimate(
        flops=6 * rows * emb_dim * hidden_dim,                 # three matmuls
        transcendentals=rows * hidden_dim,                     # sigmoid
        bytes_accessed=(2 * rows * emb_dim + 3 * emb_dim * hidden_dim)
        * dtype_bytes,
    )

    out2d = pl.pallas_call(
        _ffn_kernel,
        out_shape=jax.ShapeDtypeStruct((padded_rows, emb_dim), x.dtype),
        grid_spec=pltpu.PrefetchScalarGridSpec(
            num_scalar_prefetch=0,
            grid=grid,
            in_specs=[
                pl.BlockSpec((tm, emb_dim), lambda i, h: (i, 0)),       # x rows
                pl.BlockSpec((emb_dim, th), lambda i, h: (0, h)),       # W1^T
                pl.BlockSpec((emb_dim, th), lambda i, h: (0, h)),       # W2^T
                pl.BlockSpec((th, emb_dim), lambda i, h: (h, 0)),       # W3^T
            ],
            out_specs=pl.BlockSpec((tm, emb_dim), lambda i, h: (i, 0)),
            scratch_shapes=[pltpu.VMEM((tm, emb_dim), jnp.float32)],    # f32 acc
        ),
        compiler_params=pltpu.CompilerParams(
            dimension_semantics=("parallel", "arbitrary"),
            vmem_limit_bytes=int(vmem_limit),
        ),
        cost_estimate=cost,
    )(x2d, w1t, w2t, w3t)

    if padded_rows != rows:
        out2d = out2d[:rows]
    return out2d.reshape(orig_shape)


def feed_forward_ref(x, w1, w2, w3):
    h1 = x @ w1.T
    h2 = x @ w2.T
    h = (h1 * jax.nn.sigmoid(h1)) * h2
    return h @ w3.T


if __name__ == "__main__":
    batch, seq, emb_dim, hidden_dim = 2, 8, 32, 64

    key = jax.random.PRNGKey(0)
    kx, k1, k2, k3 = jax.random.split(key, 4)
    x = jax.random.normal(kx, (batch, seq, emb_dim), dtype=jnp.float32)
    w1 = jax.random.normal(k1, (hidden_dim, emb_dim), dtype=jnp.float32) / math.sqrt(emb_dim)
    w2 = jax.random.normal(k2, (hidden_dim, emb_dim), dtype=jnp.float32) / math.sqrt(emb_dim)
    w3 = jax.random.normal(k3, (emb_dim, hidden_dim), dtype=jnp.float32) / math.sqrt(hidden_dim)

    out = feed_forward(x, w1, w2, w3)
    out = jax.block_until_ready(out)

    ref = feed_forward_ref(x, w1, w2, w3)
    assert out.shape == x.shape and out.dtype == x.dtype
    err = float(jnp.max(jnp.abs(out - ref)))
    assert jnp.allclose(out, ref, atol=1e-3, rtol=1e-3), err

    print("KERNEL_OK")
</pallas_src>

<mosaic_0001>
module attributes {stable_mosaic.version = 11 : i64} {
  func.func @_ffn_kernel(%arg0: i32, %arg1: i32, %arg2: memref<8x32xf32, #tpu.memory_space<vmem>>, %arg3: memref<32x64xf32, #tpu.memory_space<vmem>>, %arg4: memref<32x64xf32, #tpu.memory_space<vmem>>, %arg5: memref<64x32xf32, #tpu.memory_space<vmem>>, %arg6: memref<8x32xf32, #tpu.memory_space<vmem>>, %arg7: memref<8x32xf32, #tpu.memory_space<vmem>>) attributes {dimension_semantics = [#tpu.dimension_semantics<parallel>, #tpu.dimension_semantics<arbitrary>], iteration_bounds = array<i64: 2, 1>, scalar_prefetch = 0 : i64, scratch_operands = 1 : i64, tpu.core_type = #tpu.core_type<tc>, window_params = [{transform_indices = @transform_0, window_bounds = array<i64: 8, 32>}, {transform_indices = @transform_1, window_bounds = array<i64: 32, 64>}, {transform_indices = @transform_2, window_bounds = array<i64: 32, 64>}, {transform_indices = @transform_3, window_bounds = array<i64: 64, 32>}, {transform_indices = @transform_4, window_bounds = array<i64: 8, 32>}]} {
    %c0_i32 = arith.constant 0 : i32
    %0 = arith.cmpi eq, %arg1, %c0_i32 : i32
    %1 = arith.extui %0 : i1 to i32
    %c0_i32_0 = arith.constant 0 : i32
    %2 = arith.cmpi ne, %1, %c0_i32_0 : i32
    scf.if %2 {
      %cst_19 = arith.constant 0.000000e+00 : f32
      %25 = vector.broadcast %cst_19 : f32 to vector<8x32xf32>
      %c0_20 = arith.constant 0 : index
      %c0_21 = arith.constant 0 : index
      %26 = vector.load %arg7[%c0_20, %c0_21] : memref<8x32xf32, #tpu.memory_space<vmem>>, vector<8x32xf32>
      tpu.vector_store %arg7[%c0_20, %c0_21], %25 {strides = array<i32>} : memref<8x32xf32, #tpu.memory_space<vmem>>, vector<8x32xf32>,
    } else {
    }
    %c0 = arith.constant 0 : index
    %c0_1 = arith.constant 0 : index
    %3 = vector.load %arg2[%c0, %c0_1] : memref<8x32xf32, #tpu.memory_space<vmem>>, vector<8x32xf32>
    %c0_2 = arith.constant 0 : index
    %c0_3 = arith.constant 0 : index
    %4 = vector.load %arg3[%c0_2, %c0_3] : memref<32x64xf32, #tpu.memory_space<vmem>>, vector<32x64xf32>
    %cst = arith.constant dense<0.000000e+00> : vector<8x64xf32>
    %5 = tpu.matmul %3, %4, %cst {dimension_numbers = #tpu.dot_dimension_numbers<[1], [0], [0], [1], [0, 0, 1, 1], [], []>} : vector<8x32xf32>, vector<32x64xf32>, vector<8x64xf32> -> vector<8x64xf32>
    %c0_4 = arith.constant 0 : index
    %c0_5 = arith.constant 0 : index
    %6 = vector.load %arg4[%c0_4, %c0_5] : memref<32x64xf32, #tpu.memory_space<vmem>>, vector<32x64xf32>
    %cst_6 = arith.constant dense<0.000000e+00> : vector<8x64xf32>
    %7 = tpu.matmul %3, %6, %cst_6 {dimension_numbers = #tpu.dot_dimension_numbers<[1], [0], [0], [1], [0, 0, 1, 1], [], []>} : vector<8x32xf32>, vector<32x64xf32>, vector<8x64xf32> -> vector<8x64xf32>
    %cst_7 = arith.constant 0.000000e+00 : f32
    %8 = vector.broadcast %cst_7 : f32 to vector<8x64xf32>
    %9 = arith.subf %8, %5 : vector<8x64xf32>
    %10 = math.exp %9 : vector<8x64xf32>
    %cst_8 = arith.constant 1.000000e+00 : f32
    %11 = vector.broadcast %cst_8 : f32 to vector<8x64xf32>
    %12 = arith.addf %11, %10 : vector<8x64xf32>
    %cst_9 = arith.constant 1.000000e+00 : f32
    %13 = vector.broadcast %cst_9 : f32 to vector<8x64xf32>
    %14 = arith.divf %13, %12 : vector<8x64xf32>
    %15 = arith.mulf %5, %14 : vector<8x64xf32>
    %16 = arith.mulf %15, %7 : vector<8x64xf32>
    %c0_10 = arith.constant 0 : index
    %c0_11 = arith.constant 0 : index
    %17 = vector.load %arg7[%c0_10, %c0_11] : memref<8x32xf32, #tpu.memory_space<vmem>>, vector<8x32xf32>
    %c0_12 = arith.constant 0 : index
    %c0_13 = arith.constant 0 : index
    %18 = vector.load %arg5[%c0_12, %c0_13] : memref<64x32xf32, #tpu.memory_space<vmem>>, vector<64x32xf32>
    %cst_14 = arith.constant dense<0.000000e+00> : vector<8x32xf32>
    %19 = tpu.matmul %16, %18, %cst_14 {dimension_numbers = #tpu.dot_dimension_numbers<[1], [0], [0], [1], [0, 0, 1, 1], [], []>} : vector<8x64xf32>, vector<64x32xf32>, vector<8x32xf32> -> vector<8x32xf32>
    %20 = arith.addf %17, %19 : vector<8x32xf32>
    %c0_15 = arith.constant 0 : index
    %c0_16 = arith.constant 0 : index
    %21 = vector.load %arg7[%c0_15, %c0_16] : memref<8x32xf32, #tpu.memory_space<vmem>>, vector<8x32xf32>
    tpu.vector_store %arg7[%c0_15, %c0_16], %20 {strides = array<i32>} : memref<8x32xf32, #tpu.memory_space<vmem>>, vector<8x32xf32>,
    %c0_i32_17 = arith.constant 0 : i32
    %22 = arith.cmpi eq, %arg1, %c0_i32_17 : i32
    %23 = arith.extui %22 : i1 to i32
    %c0_i32_18 = arith.constant 0 : i32
    %24 = arith.cmpi ne, %23, %c0_i32_18 : i32
    scf.if %24 {
      %c0_19 = arith.constant 0 : index
      %c0_20 = arith.constant 0 : index
      %25 = vector.load %arg7[%c0_19, %c0_20] : memref<8x32xf32, #tpu.memory_space<vmem>>, vector<8x32xf32>
      %c0_21 = arith.constant 0 : index
      %c0_22 = arith.constant 0 : index
      %26 = vector.load %arg6[%c0_21, %c0_22] : memref<8x32xf32, #tpu.memory_space<vmem>>, vector<8x32xf32>
      tpu.vector_store %arg6[%c0_21, %c0_22], %25 {strides = array<i32>} : memref<8x32xf32, #tpu.memory_space<vmem>>, vector<8x32xf32>,
    } else {
    }
    return
  }
  func.func @transform_0(%arg0: i32, %arg1: i32) -> (i32, i32) {
    %c0_i32 = arith.constant 0 : i32
    %c0_i32_0 = arith.constant 0 : i32
    return %arg0, %c0_i32 : i32, i32
  }
  func.func @transform_1(%arg0: i32, %arg1: i32) -> (i32, i32) {
    %c0_i32 = arith.constant 0 : i32
    %c0_i32_0 = arith.constant 0 : i32
    return %c0_i32, %arg1 : i32, i32
  }
  func.func @transform_2(%arg0: i32, %arg1: i32) -> (i32, i32) {
    %c0_i32 = arith.constant 0 : i32
    %c0_i32_0 = arith.constant 0 : i32
    return %c0_i32, %arg1 : i32, i32
  }
  func.func @transform_3(%arg0: i32, %arg1: i32) -> (i32, i32) {
    %c0_i32 = arith.constant 0 : i32
    %c0_i32_0 = arith.constant 0 : i32
    return %arg1, %c0_i32 : i32, i32
  }
  func.func @transform_4(%arg0: i32, %arg1: i32) -> (i32, i32) {
    %c0_i32 = arith.constant 0 : i32
    %c0_i32_0 = arith.constant 0 : i32
    return %arg0, %c0_i32 : i32, i32
  }
}

</mosaic_0001>

<bundles_post_ra>
// kernel: tpu_custom_call.1
= control target key start
LH: loop header
LB: loop body
LE: loop exit
PB: predicated region body
PF: predicated region fallthrough
CT: control target
= control target key end

     0   :  { %9 = vsyncpa [#allocation4], 0  ;;  %s1084_s0 = inlined_call_operand.vmem [shape: f32[16,32], index: 0, kind: input, shape index: {}]   ;;  %s1085_s1 = inlined_call_operand.vmem [shape: f32[32,64], index: 1, kind: input, shape index: {}]   ;;  %s1086_s2 = inlined_call_operand.vmem [shape: f32[32,64], index: 2, kind: input, shape index: {}]   ;;  %s1087_s3 = inlined_call_operand.vmem [shape: f32[64,32], index: 3, kind: input, shape index: {}]   ;;  %s1088_s4 = inlined_call_operand.hbm [shape: f32[16,32], index: 4, kind: output, shape index: {}]  }
   0x1   :  { %11 = vsyncpa [#allocation4 + $0x1], 0  ;;  %s916_s15 = smov 0   ;;  %s918_s16 = smov 0  }
   0x2   :  { %s920_s17 = smov 0   ;;  %s922_s18 = smov 0  }
   0x3   :  { %s924_s19 = smov 0   ;;  %s926_s20 = smov 0  }
   0x4 LB: > { %s644_s21 = sadd.s32 4294967295, %s885_s20   ;;  %s645_s22 = sadd.s32 4294967294, %s885_s20   ;;  %s885_s20 = sphi %s926_s20, %s17_s20   ;;  %s881_s19 = sphi %s924_s19, %s1095_s19   ;;  %s877_s18 = sphi %s922_s18, %s1094_s18   ;;  %s873_s17 = sphi %s920_s17, %s1093_s17   ;;  %s869_s16 = sphi %s918_s16, %s1092_s16   ;;  %s865_s15 = sphi %s916_s15, %s1091_s15  }
   0x5   : > { %s29_s23 = sadd.s32 1, %s881_s19  ;;  %s140_s24 = sadd.s32 1, %s873_s17 }
   0x6   : > { %p31_p0 = scmp.ge.s32.totalorder %s29_s23, 2  ;;  %p150_p1 = scmp.ne.s32.totalorder %s873_s17, %s869_s16 }
   0x7   : > { %p151_p2 = scmp.eq.s32.totalorder %s644_s21, 1  ;;  %p156_p3 = scmp.ne.s32.totalorder %s869_s16, %s865_s15 }
   0x8   : > { %s1097_s23 = smov (%p31_p0, %s29_s23), 0  ;;  %p157_p5 = scmp.eq.s32.totalorder %s645_s22, 1 }
   0x9   : > { %p956_p4 = por %p151_p2, %p150_p1  ;;  %s137_s26 = ssub.s32 %s881_s19, %s1097_s23 }
   0xa   : > { %p651_p6 = scmp.ge.s32.totalorder %s885_s20, 1  ;;  %p138_p7 = scmp.eq.s32.totalorder %s137_s26, 0 }
   0xb   : > { %p963_p8 = por %p157_p5, %p156_p3  ;;  %p205_p9 = scmp.lt.s32.totalorder %s885_s20, 3 }
   0xc   : > { %s969_s28 = scalar_select %p138_p7, %s873_s17, %s140_s24  }
   0xd   : > { %p206_p10 = pnand %p651_p6, %p205_p9 }
   0xe   : > { %v268_v0 = vld [vmem:[%s1085_s1] sm:$0xff] (!%p206_p10)  ;;  %v269_v1 = vld [vmem:[%s1085_s1 + $0x8] sm:$0xff] (!%p206_p10)  ;;  %v270_v2 = vld [vmem:[%s1085_s1 + $0x10] sm:$0xff] (!%p206_p10)  ;;  %v887_v3 = vmov (!%p206_p10), 0.0|0.0   ;;  %vm888_vm0 = vmmov (!%p206_p10), 0   ;;  %v889_v6 = vmov (!%p206_p10), 0.0  }
   0xf   : > { %209 = sbr.rel (%p206_p10) target bundleno = 507 (0x1fb), region = 36  ;;  %721 = vmatprep.subr.bf16.mxu1 (!%p206_p10), %v887_v3  ;;  %v722_v4 = vpack.c.bf16 (!%p206_p10), %v269_v1, %v268_v0  ;;  %v271_v5 = vld [vmem:[%s1085_s1 + $0x18] sm:$0xff] (!%p206_p10)  ;;  %688 = vmatprep.mubr.msk.f32.mxu1 (!%p206_p10), %vm888_vm0, %v889_v6  ;;  %p243_p11 = scmp.lt.s32.totalorder (!%p206_p10), %s877_s18, 1  ;;  %vm265_vm1 = vcmask (!%p206_p10), 261120   ;;  %v346_v8 = vld [vmem:[%s1086_s2] sm:$0xff] (!%p206_p10)  ;;  %v347_v9 = vld [vmem:[%s1086_s2 + $0x8] sm:$0xff] (!%p206_p10) }
  0x10   : > { %266 = vst.msk [vmem:[#allocation2] sm:$0xff] (!%p206_p10), %vm265_vm1, %v889_v6  ;;  %733 = vmatprep.subr.bf16.mxu0 (!%p206_p10), %v887_v3  ;;  %718 = vmatprep.mubr.msk.f32.mxu0 (!%p206_p10), %vm888_vm0, %v889_v6  ;;  %v725_v7 = vpack.c.bf16 (!%p206_p10), %v271_v5, %v270_v2  ;;  %v728_v11 = vpack.c.bf16 (!%p206_p10), %v347_v9, %v346_v8  ;;  %v348_v12 = vld [vmem:[%s1086_s2 + $0x10] sm:$0xff] (!%p206_p10)  ;;  %v349_v13 = vld [vmem:[%s1086_s2 + $0x18] sm:$0xff] (!%p206_p10)  ;;  %v429_v15 = vld [vmem:[%s1087_s3] sm:$0xff] (!%p206_p10)  ;;  %vm437_vm2 = vcmask (!%p206_p10), 523264   ;;  %s240_s8 = sand.u32 (!%p206_p10), 1, %s869_s16  }
  0x11   : > { %723 = vmatpush3.bf16.msra.mxu1 (!%p206_p10), %v722_v4  ;;  %v731_v14 = vpack.c.bf16 (!%p206_p10), %v349_v13, %v348_v12  ;;  %v430_v16 = vld [vmem:[%s1087_s3 + $0x8] sm:$0xff] (!%p206_p10)  ;;  %v431_v18 = vld [vmem:[%s1087_s3 + $0x10] sm:$0xff] (!%p206_p10)  ;;  %v432_v19 = vld [vmem:[%s1087_s3 + $0x18] sm:$0xff] (!%p206_p10)  ;;  %s652_s9 = sshll.u32 (!%p206_p10), %s240_s8, 3  ;;  %s658_s10 = sshll.u32 (!%p206_p10), %s877_s18, 7 }
  0x12   : > { %724 = vmatprep.subr.bf16.mxu1 (!%p206_p10), %v887_v3  ;;  %v734_v17 = vpack.c.bf16 (!%p206_p10), %v430_v16, %v429_v15  ;;  %v737_v20 = vpack.c.bf16 (!%p206_p10), %v432_v19, %v431_v18  ;;  %v433_v21 = vld [vmem:[%s1087_s3 + $0x20] sm:$0xff] (!%p206_p10)  ;;  %v434_v22 = vld [vmem:[%s1087_s3 + $0x28] sm:$0xff] (!%p206_p10)  ;;  %v435_v24 = vld [vmem:[%s1087_s3 + $0x30] sm:$0xff] (!%p206_p10)  ;;  %s1036_s21 = scalar_lea.hbm (!%p206_p10), %s1088_s4, %s658_s10 }
  0x13   : > { %v740_v23 = vpack.c.bf16 (!%p206_p10), %v434_v22, %v433_v21  ;;  %v436_v25 = vld [vmem:[%s1087_s3 + $0x38] sm:$0xff] (!%p206_p10) }
  0x14   : > { %735 = vmatpush3.bf16.msra.mxu0 (!%p206_p10), %v734_v17  ;;  %v743_v26 = vpack.c.bf16 (!%p206_p10), %v436_v25, %v435_v24 }
  0x15   : > { %726 = vmatpush3.bf16.msra.mxu1 (!%p206_p10), %v725_v7  ;;  %736 = vmatprep.subr.bf16.mxu0 (!%p206_p10), %v887_v3 }
  0x16   : > { %s244_s11 = scalar_select %p243_p11, %s877_s18, 1  ;;  %727 = vmatprep.subr.bf16.mxu1 %v887_v3 }
  0x17   : > { %v428_v38 = vld [vmem:[#allocation2] sm:$0xff]  ;;  %s890_s18 = smov [#allocation3]  }
  0x18   : > { %s653_s22 = sshll.u32 %s244_s11, 3  ;;  %738 = vmatpush3.bf16.msra.mxu0 %v737_v20  ;;  %s242_s11 = scalar_lea.vmem [#allocation3], %s652_s9 }
  0x19   : > { %s246_s29 = scalar_lea.vmem %s1084_s0, %s653_s22  ;;  %739 = vmatprep.subr.bf16.mxu0 %v887_v3  ;;  %s532_s12 = sshll.u32 %s242_s11, 4  ;;  %s1038_s12 = int_to_ptr.vmem [resolvable:$true] %s532_s12 }
  0x1a   : > { %v267_v10 = vld [vmem:[%s246_s29] sm:$0xff]  ;;  %s519_s22 = scalar_lea.sflag [#allocation4], %s240_s8  ;;  %s807_s24 = scalar_lea.vmem %s1038_s12, 128 }
  0x1b   : > { %689 = vmatmul.mubr.msk.f32.vlgmr.msra.gmra.mrb[0].mxu1 %vm265_vm1, %v267_v10  ;;  %p808_p12 = scmp.ne.s32.totalorder %s1038_s12, %s807_s24  ;;  %s811_s26 = sshll.u32 %s890_s18, 4  ;;  %s812_s26 = int_to_ptr.vmem [resolvable:$false] %s811_s26 }
  0x1c   : > { %729 = vmatpush3.bf16.msra.mxu1 %v728_v11  ;;  %699 = vmatprep.mubr.msk.f32.mxu1 %vm888_vm0, %v889_v6  ;;  %s813_s29 = scalar_lea.vmem %s812_s26, 256  ;;  %p814_p1 = scmp.lt.s32.totalorder %s1038_s12, %s812_s26 }
  0x1d   : > { %730 = vmatprep.subr.bf16.mxu1 %v887_v3  ;;  %741 = vmatpush3.bf16.msra.mxu0 %v740_v23  ;;  %p809_p13 = pnand %p808_p12, %p956_p4  ;;  %p815_p2 = scmp.lt.s32.totalorder %s813_s29, %s807_s24 }
  0x1e   : > { %742 = vmatprep.subr.bf16.mxu0 %v887_v3 }
  0x1f   : > { %p810_p0 = pneg %p809_p13  ;;  %p816_p3 = por %p815_p2, %p814_p1 }
  0x20   : > { %732 = vmatpush3.bf16.msra.mxu1 %v731_v14 }
  0x21   : > { %744 = vmatpush3.bf16.msra.mxu0 %v743_v26  ;;  %p817_p5 = pnand %p816_p3, %p810_p0 }
  0x23   : > { %700 = vmatmul.mubr.msk.f32.vlgmr.msra.gmra.mrb[2].mxu1 %vm265_vm1, %v267_v10 }
  0xee   : > { %v342_v27 = vpop.f32.mrb[0].mxu1 }
  0xef   : > { %v420_v28 = vsub.f32 0.0, %v342_v27  ;;  %v690_v29 = vpop.f32.mrb[1].mxu1 }
  0xf1   : > { %v421_v30 = vmul.f32 1.442695, %v420_v28 }
  0xf3   : > { %803 = vpow2.f32 %v421_v30 }
  0xf6   : > { %v416_v31 = vpop.f32.mrb[2].mxu1 }
  0xf7   : > { %v701_v32 = vpop.f32.mrb[3].mxu1 }
  0xfd   : > { %v804_v33 = vpop.eup %803 }
  0xfe   : > { %v423_v34 = vadd.f32 1.0, %v804_v33 }
 0x100   : > { %805 = vrcp.f32 %v423_v34 }
 0x10a   : > { %v806_v35 = vpop.eup %805 }
 0x10b   : > { %v426_v36 = vmul.f32 %v806_v35, %v342_v27 }
 0x10d   : > { %v427_v37 = vmul.f32 %v426_v36, %v416_v31 }
 0x10f   : > { %719 = vmatmul.mubr.msk.f32.vlgmr.msra.gmra.mrb[0].mxu0 %vm437_vm2, %v427_v37 }
 0x1e2   : > { %v507_v39 = vpop.f32.mrb[0].mxu0 }
 0x1e3   : > { %v511_v40 = vadd.f32 %v507_v39, %v428_v38  ;;  %v720_v41 = vpop.f32.mrb[1].mxu0 }
 0x1e5   : > { %512 = vst.msk [vmem:[#allocation2] sm:$0xff] %vm265_vm1, %v511_v40 }
 0x1ec   : > { %v516_v42 = vld [vmem:[#allocation2] sm:$0xff] }
 0x1ed   : > { %517 = vst.msk [vmem:[%s242_s11] sm:$0xff] %vm265_vm1, %v516_v42 }
 0x1ee   : > { %820 = shalt.err (!%p817_p5)
}
 0x1ef   : > { %s821_s30 = scalar_lea.hbm %s1036_s21, 128  ;;  %s825_s7 = scalar_lea.hbm %s1088_s4, 256 }
 0x1f0   : > { %p822_p6 = scmp.ne.s32.totalorder %s1036_s21, %s821_s30  ;;  %p826_p10 = scmp.lt.u32.totalorder %s1036_s21, %s1088_s4 }
 0x1f1   : > { %p827_p11 = scmp.lt.u32.totalorder %s825_s7, %s821_s30  ;;  %p829_p13 = scmp.lt.u32.totalorder %s821_s30, %s1036_s21 }
 0x1f2   : > { %p823_p7 = pnand %p822_p6, %p956_p4 }
 0x1f3   : > { %p828_p12 = por %p827_p11, %p826_p10 }
 0x1f4   : > { %p824_p9 = pneg %p823_p7 }
 0x1f5   : > { %p830_p0 = por %p829_p13, %p828_p12 }
 0x1f7   : > { %p831_p1 = pnand %p830_p0, %p824_p9 }
 0x1f9   : > { %834 = shalt.err (!%p831_p1)
}
 0x1fa   : > { %745 = dma.vmem_to_hbm [thread:$0]  (%p956_p4), %s1038_s12, 128, %s1036_s21, %s519_s22  }
 0x1fb PF: > { %p751_p2 = scmp.ge.s32.totalorder %s885_s20, 2  ;;  %s544_s10 = sand.u32 1, %s865_s15  }
 0x1fc   : > { %s545_s11 = scalar_lea.sflag [#allocation4], %s544_s10 }
 0x1fd   : > { %p748_p3 = pnand %p751_p2, %p963_p8 }
 0x1ff   : > { %860 = dma.done.wait (!%p748_p3), %s545_s11, 128  }
 0x200   : > { %862 = vsyncadd (!%p748_p3), %s545_s11, 4294967168  ;;  %s17_s20 = sadd.s32 1, %s885_s20   ;;  %s1091_s15 = smov %s869_s16 }
 0x201   : > { %p14_p5 = scmp.ge.s32.totalorder %s17_s20, 4   ;;  %s1092_s16 = smov %s873_s17 }
 0x202   : > { %s1093_s17 = smov %s969_s28  ;;  %s1094_s18 = smov %s881_s19 }
 0x203   : > { %s1095_s19 = smov %s1097_s23  ;;  %16 = sbr.rel (!%p14_p5) target bundleno = 4 (0x4), region = 88 }
 0x20a   :  { %550 = vsyncpa [#allocation4], 1 }
 0x20b   :  { %552 = vsyncpa [#allocation4 + $0x1], 1 }

</bundles_post_ra>
